<compile_context>
chip_gen: v7x
topology: tpu7x:2x2x1
jax: 0.10.0
libtpu: 0.0.40
codegen_flags: <defaults>
</compile_context>

<pallas_src>
import functools

import jax
import jax.numpy as jnp
from jax.experimental import pallas as pl
from jax.experimental.pallas import tpu as pltpu


def _l2norm_kernel(x_ref, o_ref, *, embedding_dim, eps):
    x = x_ref[...]
    if x.shape[-1] != embedding_dim:
        # Static slice of the loaded block (generic path ragged tail).
        x = x[:, :embedding_dim]
    # Squared-sum reduction with f32 accumulation (accuracy for bf16 inputs).
    xf = x.astype(jnp.float32)
    sq_sum = jnp.sum(xf * xf, axis=-1, keepdims=True)
    # x / max(sqrt(ss), eps) == x * rsqrt(max(ss, eps^2))  (eps > 0); rsqrt -> EUP.
    inv = jax.lax.rsqrt(jnp.maximum(sq_sum, jnp.float32(eps) * jnp.float32(eps)))
    # Final scale in the native dtype: avoids a tile-sized f32 product temp.
    o_ref[...] = (x * inv.astype(x.dtype)).astype(o_ref.dtype)


def _round_up(v, m):
    return ((int(v) + m - 1) // m) * m


def _vmem_budgets():
    """(block_budget_bytes, vmem_limit_bytes), generation-aware."""
    try:
        cap = int(pltpu.get_tpu_info().vmem_capacity_bytes)
    except Exception:
        cap = 64 << 20  # conservative fallback (v7x per-TC VMEM)
    vmem_limit = min(64 << 20, (cap * 5) // 8)   # 128MiB->64MiB, 64MiB->40MiB
    block_budget = (vmem_limit * 3) // 4         # ->48MiB / ->30MiB
    return block_budget, vmem_limit


def _choose_row_tile(n_rows, in_width, out_width, dtype_bytes, budget_bytes):
    """Largest row tile whose real VMEM footprint fits the budget."""
    # Double-buffered input + output blocks, plus the (single) f32 intermediate
    # produced by the squared-sum reduction inside the kernel.
    per_row = 2 * (in_width + out_width) * dtype_bytes + 4 * in_width
    t = budget_bytes // max(per_row, 1)
    n8 = _round_up(n_rows, 8)
    t = min(int(t), n8)
    t = max(8, (t // 8) * 8)
    # Prefer >= 8 grid steps (pipeline overlap + megacore sharding on v7x), but
    # never shrink tiles below 1024 rows (per-grid-step overhead amortization).
    min_steps = 8
    steps = -(-n8 // t)
    if steps < min_steps:
        alt = _round_up(-(-n8 // min_steps), 8)
        if alt >= 1024:
            t = alt
    return t


def l2norm_postprocess(output_embeddings: jax.Array,
                       embedding_dim: int,
                       eps: float = 1e-6,
                       row_tile: int | None = None) -> jax.Array:
    """JAX/Pallas equivalent of L2NormEmbeddingPostprocessor.forward."""
    lead_shape = output_embeddings.shape[:-1]
    hidden = int(output_embeddings.shape[-1])
    d = int(embedding_dim)
    assert 0 < d <= hidden, (d, hidden)

    n = 1
    for s in lead_shape:
        n *= int(s)
    x2d = output_embeddings.reshape(n, hidden)  # contiguous -> free reshape

    itemsize = jnp.dtype(x2d.dtype).itemsize
    # Input block width: round d up to a 128-lane multiple (divisible-by-128
    # blocks at lane offset 0 are legal); fall back to the full hidden width
    # only when the rounded width would exceed it.  The in-kernel [:, :d]
    # slice handles the ragged tail.
    in_block_w = min(_round_up(d, 128), hidden)

    block_budget, vmem_limit = _vmem_budgets()
    if row_tile is None:
        row_tile = _choose_row_tile(n, in_block_w, d, itemsize, block_budget)
    row_tile = max(8, (int(row_tile) // 8) * 8)

    grid = (pl.cdiv(n, row_tile),)

    out = pl.pallas_call(
        functools.partial(_l2norm_kernel, embedding_dim=d, eps=eps),
        out_shape=jax.ShapeDtypeStruct((n, d), output_embeddings.dtype),
        grid_spec=pltpu.PrefetchScalarGridSpec(
            num_scalar_prefetch=0,
            grid=grid,
            in_specs=[pl.BlockSpec((row_tile, in_block_w), lambda i: (i, 0))],
            out_specs=pl.BlockSpec((row_tile, d), lambda i: (i, 0)),
        ),
        compiler_params=pltpu.CompilerParams(
            dimension_semantics=("parallel",),
            vmem_limit_bytes=int(vmem_limit),
        ),
        cost_estimate=pl.CostEstimate(
            flops=3 * n * d,
            transcendentals=n,
            bytes_accessed=int((n * in_block_w + n * d) * itemsize),
        ),
    )(x2d)

    return out.reshape(*lead_shape, d)


def _reference(x, embedding_dim, eps=1e-6):
    y = x[..., :embedding_dim].astype(jnp.float32)
    norm = jnp.sqrt(jnp.sum(y * y, axis=-1, keepdims=True))
    return (y / jnp.maximum(norm, eps)).astype(x.dtype)


if __name__ == "__main__":
    eps = 1e-6

    # Case 1: generic path, f32 (embedding_dim not a multiple of 128).
    x1 = jax.random.normal(jax.random.PRNGKey(0), (2, 8, 48), dtype=jnp.float32)
    out1 = jax.block_until_ready(l2norm_postprocess(x1, 32, eps))
    ref1 = _reference(x1, 32, eps)
    assert out1.shape == (2, 8, 32), out1.shape
    assert jnp.allclose(out1, ref1, atol=1e-5, rtol=1e-5), "mismatch (generic path)"

    # Case 2: lane-dense fused-slice path, f32 (embedding_dim % 128 == 0).
    x2 = jax.random.normal(jax.random.PRNGKey(1), (2, 8, 192), dtype=jnp.float32)
    out2 = jax.block_until_ready(l2norm_postprocess(x2, 128, eps))
    ref2 = _reference(x2, 128, eps)
    assert out2.shape == (2, 8, 128), out2.shape
    assert jnp.allclose(out2, ref2, atol=1e-5, rtol=1e-5), "mismatch (lane-dense path)"

    # Case 3: bf16, generic path with rounded-up 128-multiple input window.
    x3 = jax.random.normal(jax.random.PRNGKey(2), (4, 8, 320)).astype(jnp.bfloat16)
    out3 = jax.block_until_ready(l2norm_postprocess(x3, 160, eps))
    ref3 = _reference(x3, 160, eps)
    assert out3.shape == (4, 8, 160), out3.shape
    assert jnp.allclose(out3.astype(jnp.float32), ref3.astype(jnp.float32),
                        atol=2e-2, rtol=2e-2), "mismatch (bf16 path)"

    print("KERNEL_OK")
</pallas_src>

<mosaic_0001>
module attributes {stable_mosaic.version = 11 : i64} {
  func.func @_l2norm_kernel(%arg0: i32, %arg1: memref<16x48xf32, #tpu.memory_space<vmem>>, %arg2: memref<16x32xf32, #tpu.memory_space<vmem>>) attributes {dimension_semantics = [#tpu.dimension_semantics<parallel>], iteration_bounds = array<i64: 1>, scalar_prefetch = 0 : i64, scratch_operands = 0 : i64, tpu.core_type = #tpu.core_type<tc>, window_params = [{transform_indices = @transform_0, window_bounds = array<i64: 16, 48>}, {transform_indices = @transform_1, window_bounds = array<i64: 16, 32>}]} {
    %c0 = arith.constant 0 : index
    %c0_0 = arith.constant 0 : index
    %0 = vector.load %arg1[%c0, %c0_0] : memref<16x48xf32, #tpu.memory_space<vmem>>, vector<16x48xf32>
    %1 = vector.extract_strided_slice %0 {offsets = [0, 0], sizes = [16, 32], strides = [1, 1]} : vector<16x48xf32> to vector<16x32xf32>
    %2 = arith.mulf %1, %1 : vector<16x32xf32>
    %cst = arith.constant dense<0.000000e+00> : vector<16xf32>
    %3 = vector.multi_reduction <add>, %2, %cst [1] : vector<16x32xf32> to vector<16xf32>
    %4 = vector.shape_cast %3 : vector<16xf32> to vector<16x1xf32>
    %cst_1 = arith.constant 9.99999997E-7 : f32
    %cst_2 = arith.constant 9.99999997E-7 : f32
    %5 = arith.mulf %cst_1, %cst_2 : f32
    %6 = vector.broadcast %5 : f32 to vector<16x1xf32>
    %7 = arith.maximumf %4, %6 : vector<16x1xf32>
    %8 = math.rsqrt %7 : vector<16x1xf32>
    %9 = vector.broadcast %8 : vector<16x1xf32> to vector<16x32xf32>
    %10 = arith.mulf %1, %9 : vector<16x32xf32>
    %c0_3 = arith.constant 0 : index
    %c0_4 = arith.constant 0 : index
    %11 = vector.load %arg2[%c0_3, %c0_4] : memref<16x32xf32, #tpu.memory_space<vmem>>, vector<16x32xf32>
    tpu.vector_store %arg2[%c0_3, %c0_4], %10 {strides = array<i32>} : memref<16x32xf32, #tpu.memory_space<vmem>>, vector<16x32xf32>,
    return
  }
  func.func @transform_0(%arg0: i32) -> (i32, i32) {
    %c0_i32 = arith.constant 0 : i32
    %c0_i32_0 = arith.constant 0 : i32
    return %arg0, %c0_i32 : i32, i32
  }
  func.func @transform_1(%arg0: i32) -> (i32, i32) {
    %c0_i32 = arith.constant 0 : i32
    %c0_i32_0 = arith.constant 0 : i32
    return %arg0, %c0_i32 : i32, i32
  }
}

</mosaic_0001>

<bundles_post_ra>
// kernel: tpu_custom_call.1
= control target key start
LH: loop header
LB: loop body
LE: loop exit
PB: predicated region body
PF: predicated region fallthrough
CT: control target
= control target key end

     0   :  { %6 = vsyncpa [#allocation3], 0  ;;  %s163_s0 = inlined_call_operand.hbm [shape: f32[16,48], index: 0, kind: input, shape index: {}]   ;;  %s164_s1 = inlined_call_operand.hbm [shape: f32[16,32], index: 1, kind: output, shape index: {}]  }
   0x1   :  { %7 = vsyncpa [#allocation4], 0  ;;  %s115_s6 = smov [#allocation2]   ;;  %s67_s10 = scalar_lea.hbm %s163_s0, 256 }
   0x2   :  { %s13_s7 = sshll.u32 %s115_s6, 4  ;;  %p68_p0 = scmp.ne.s32.totalorder %s163_s0, %s67_s10  ;;  %s14_s7 = int_to_ptr.vmem [resolvable:$true] %s13_s7 }
   0x3   :  { %p71_p1 = scmp.lt.u32.totalorder %s67_s10, %s163_s0 }
   0x5   :  { %p73_p2 = pnand %p71_p1, %p68_p0 }
   0x7   :  { %76 = shalt.err (!%p73_p2)
}
   0x8   :  { %s77_s15 = scalar_lea.vmem %s14_s7, 256  ;;  %p82_p4 = scmp.lt.s32.totalorder %s14_s7, %s14_s7 }
   0x9   :  { %p78_p3 = scmp.ne.s32.totalorder %s14_s7, %s77_s15  ;;  %p83_p5 = scmp.lt.s32.totalorder %s77_s15, %s77_s15 }
   0xb   :  { %p84_p6 = por %p83_p5, %p82_p4 }
   0xd   :  { %p85_p7 = pnand %p84_p6, %p78_p3 }
   0xf   :  { %88 = shalt.err (!%p85_p7)
}
  0x10   :  { %s116_s16 = smov 128   ;;  %s117_s17 = smov 8  }
  0x11   :  { %19 = dma.hbm_to_vmem [thread:$0]  %s163_s0, 256, %s14_s7, [#allocation3], %s116_s16, %s116_s16, %s117_s17  }
  0x12   :  { %111 = dma.done.wait [#allocation3], 256  }
  0x13   :  { %112 = vsyncadd [#allocation3], 4294967040  ;;  %v23_v0 = vld [vmem:[#allocation2] sm:$0xff]  ;;  %vm27_vm0 = vcmask 261120   ;;  %v24_v1 = vld [vmem:[#allocation2 + $0x8] sm:$0xff]  ;;  %s118_s0 = smov [#allocation5]  }
  0x14   :  { %v25_v2 = vmul.f32 %v23_v0, %v23_v0  ;;  %v26_v3 = vmul.f32 %v24_v1, %v24_v1  ;;  %s47_s20 = sshll.u32 %s118_s0, 4  ;;  %s48_s20 = int_to_ptr.vmem [resolvable:$true] %s47_s20 }
  0x15   :  { %s89_s21 = scalar_lea.vmem %s48_s20, 256  ;;  %p94_p9 = scmp.lt.s32.totalorder %s48_s20, %s48_s20 }
  0x16   :  { %v28_v4 = vsel %vm27_vm0, %v25_v2, 0.0  ;;  %v31_v5 = vsel %vm27_vm0, %v26_v3, 0.0  ;;  %p90_p8 = scmp.ne.s32.totalorder %s48_s20, %s89_s21  ;;  %p95_p10 = scmp.lt.s32.totalorder %s89_s21, %s89_s21 }
  0x17   :  { %29 = vadd.xlane.f32.xlu0 %v28_v4 }
  0x18   :  { %p96_p11 = por %p95_p10, %p94_p9 }
  0x1a   :  { %p97_p12 = pnand %p96_p11, %p90_p8 }
  0x1b   :  { %32 = vadd.xlane.f32.xlu0 %v31_v5 }
  0xa4   :  { %v30_v6 = vpop.xlane.xlu0 %29 }
  0xa5   :  { %v34_v7 = vmax.f32 %v30_v6, 1e-12 }
  0xa7   :  { %63 = vrsqrt.f32 %v34_v7 }
  0xa8   :  { %v33_v8 = vpop.xlane.xlu0 %32 }
  0xa9   :  { %v35_v9 = vmax.f32 %v33_v8, 1e-12 }
  0xab   :  { %65 = vrsqrt.f32 %v35_v9 }
  0xb1   :  { %v64_v10 = vpop.eup %63 }
  0xb2   :  { %v38_v11 = vmul.f32 %v64_v10, %v23_v0 }
  0xb4   :  { %40 = vst.msk [vmem:[#allocation5] sm:$0xff] %vm27_vm0, %v38_v11 }
  0xb5   :  { %v66_v12 = vpop.eup %65 }
  0xb6   :  { %v39_v13 = vmul.f32 %v66_v12, %v24_v1 }
  0xb8   :  { %41 = vst.msk [vmem:[#allocation5 + $0x8] sm:$0xff] %vm27_vm0, %v39_v13 }
  0xb9   :  { %100 = shalt.err (!%p97_p12)
}
  0xba   :  { %s101_s24 = scalar_lea.hbm %s164_s1, 256 }
  0xbb   :  { %p102_p13 = scmp.ne.s32.totalorder %s164_s1, %s101_s24  ;;  %p105_p0 = scmp.lt.u32.totalorder %s101_s24, %s164_s1 }
  0xbd   :  { %p107_p1 = pnand %p105_p0, %p102_p13 }
  0xbf   :  { %110 = shalt.err (!%p107_p1)
}
  0xc0   :  { %53 = dma.vmem_to_hbm [thread:$0]  %s48_s20, 256, %s164_s1, [#allocation4], %s116_s16, %s116_s16, %s117_s17  }
  0xc1   :  { %113 = dma.done.wait [#allocation4], 256  }
  0xc2   :  { %114 = vsyncadd [#allocation4], 4294967040 }
  0xc3   :  { %57 = vsyncpa [#allocation3], 1 }
  0xc4   :  { %58 = vsyncpa [#allocation4], 1 }

</bundles_post_ra>
